<compile_context>
chip_gen: v7x
topology: tpu7x:2x2x1
jax: 0.10.0
libtpu: 0.0.40
codegen_flags: <defaults>
</compile_context>

<pallas_src>
import functools
import math

import jax
import jax.numpy as jnp
from jax import lax
from jax.experimental import pallas as pl
from jax.experimental.pallas import tpu as pltpu

LLAMBDA = 0.99      # AttentionAwareKDLoss(llambda=0.99)
ALPHA = 0.9         # KDLoss(alpha=0.9)
TOTAL_EPOCHS = 10   # only used by .step() in the PyTorch module, not forward

_NEG_BIG = -1e30                       # padding fill / running-max init
_TILE_BYTES_TARGET = 2 * 1024 * 1024   # per-input, per-pipeline-buffer tile
                                       # budget (2 inputs x 2 buffers ~ 8 MiB:
                                       # safe on v5e/v6e/v7x scoped VMEM)


def _cdiv(a, b):
    return -(-a // b)


# ---------------------------------------------------------------------------
# Fused attention-KL kernel over stacked layers.
#   grid = (L, ND); input block = (layer, B, R, 128)
#   KL_l = (1/B) * sum_b sum_d p_t[b,d] * (log p_t[b,d] - log p_s[b,d])
# via single-pass, per-lane online log-sum-exp.
# ---------------------------------------------------------------------------
def _at_layers_kernel(t_ref, s_ref, out_ref,
                      mt_ref, zt_ref, sts_ref, ms_ref, zs_ref):
    d = pl.program_id(1)
    nd = pl.num_programs(1)
    batch = t_ref.shape[0]

    @pl.when(d == 0)
    def _init():
        mt_ref[...] = jnp.full_like(mt_ref, _NEG_BIG)
        ms_ref[...] = jnp.full_like(ms_ref, _NEG_BIG)
        zt_ref[...] = jnp.zeros_like(zt_ref)
        zs_ref[...] = jnp.zeros_like(zs_ref)
        sts_ref[...] = jnp.zeros_like(sts_ref)

    t = t_ref[...].astype(jnp.float32)          # (B, R, 128)
    s = s_ref[...].astype(jnp.float32)

    # Teacher: per-lane online LSE + weighted (t - s) sum; exp computed once.
    mt_tile = jnp.max(t, axis=1, keepdims=True)              # (B, 1, 128)
    mt_new = jnp.maximum(mt_ref[...], mt_tile)
    scale_t = jnp.exp(mt_ref[...] - mt_new)
    e_t = jnp.exp(t - mt_new)
    zt_ref[...] = zt_ref[...] * scale_t + jnp.sum(e_t, axis=1, keepdims=True)
    sts_ref[...] = (sts_ref[...] * scale_t
                    + jnp.sum(e_t * (t - s), axis=1, keepdims=True))
    mt_ref[...] = mt_new

    # Student: per-lane online LSE.
    ms_tile = jnp.max(s, axis=1, keepdims=True)
    ms_new = jnp.maximum(ms_ref[...], ms_tile)
    scale_s = jnp.exp(ms_ref[...] - ms_new)
    e_s = jnp.exp(s - ms_new)
    zs_ref[...] = zs_ref[...] * scale_s + jnp.sum(e_s, axis=1, keepdims=True)
    ms_ref[...] = ms_new

    @pl.when(d == nd - 1)
    def _finalize():
        mt = mt_ref[...]                                     # (B, 1, 128)
        ms = ms_ref[...]
        mt_row = jnp.max(mt, axis=2, keepdims=True)          # (B, 1, 1)
        ms_row = jnp.max(ms, axis=2, keepdims=True)
        a_t = jnp.exp(mt - mt_row)
        a_s = jnp.exp(ms - ms_row)
        z_t = jnp.sum(zt_ref[...] * a_t, axis=2, keepdims=True)
        z_s = jnp.sum(zs_ref[...] * a_s, axis=2, keepdims=True)
        s_ts = jnp.sum(sts_ref[...] * a_t, axis=2, keepdims=True)
        kl_rows = (s_ts / z_t
                   + (ms_row + jnp.log(z_s)) - (mt_row + jnp.log(z_t)))
        kl = (jnp.sum(kl_rows) / batch).reshape(1, 1)
        out_ref[...] = jnp.broadcast_to(kl, out_ref.shape)


def _at_loss_per_layer(t_stack, s_stack):
    """t_stack/s_stack: [L, B, D] flattened features. Returns per-layer KL [L]."""
    L, B, D = t_stack.shape
    itemsize = max(t_stack.dtype.itemsize, s_stack.dtype.itemsize)

    rows = _cdiv(D, 128)
    rows8 = _cdiv(rows, 8) * 8
    r_budget = max(8, (_TILE_BYTES_TARGET // (B * 128 * itemsize)) // 8 * 8)
    nd = _cdiv(rows8, r_budget)
    tile_rows = _cdiv(_cdiv(rows8, nd), 8) * 8
    rows_total = nd * tile_rows
    d_pad = rows_total * 128

    def prep(x):
        if d_pad != D:
            fill = jnp.full((L, B, d_pad - D), _NEG_BIG, dtype=x.dtype)
            x = jnp.concatenate([x, fill], axis=-1)
        return x.reshape(L, B, rows_total, 128)

    tp = prep(t_stack)
    sp = prep(s_stack)

    out = pl.pallas_call(
        _at_layers_kernel,
        out_shape=jax.ShapeDtypeStruct((L, 8, 128), jnp.float32),
        grid_spec=pltpu.PrefetchScalarGridSpec(
            num_scalar_prefetch=0,
            grid=(L, nd),
            in_specs=[
                pl.BlockSpec((None, B, tile_rows, 128), lambda l, k: (l, 0, k, 0)),
                pl.BlockSpec((None, B, tile_rows, 128), lambda l, k: (l, 0, k, 0)),
            ],
            out_specs=pl.BlockSpec((None, 8, 128), lambda l, k: (l, 0, 0)),
            scratch_shapes=[pltpu.VMEM((B, 1, 128), jnp.float32)
                            for _ in range(5)],
        ),
        compiler_params=pltpu.CompilerParams(
            dimension_semantics=("parallel", "arbitrary"),
            vmem_limit_bytes=32 * 1024 * 1024),
    )(tp, sp)
    return out[:, 0, 0]


# ---------------------------------------------------------------------------
# KDLoss on logits: alpha * KL(log_softmax(s), softmax(t)) + (1-alpha) * CE.
# Logits are tiny ([B, num_classes]) -> single VMEM block, scalar SMEM output.
# ---------------------------------------------------------------------------
def _kd_kernel(t_ref, s_ref, o_ref, *, alpha):
    t = t_ref[...].astype(jnp.float32)
    s = s_ref[...].astype(jnp.float32)
    batch, num_classes = t.shape

    m_t = jnp.max(t, axis=1, keepdims=True)
    e_t = jnp.exp(t - m_t)                      # teacher exp computed once
    z_t = jnp.sum(e_t, axis=1, keepdims=True)
    log_pt = (t - m_t) - jnp.log(z_t)
    p_t = e_t / z_t

    m_s = jnp.max(s, axis=1, keepdims=True)
    z_s = jnp.sum(jnp.exp(s - m_s), axis=1, keepdims=True)
    log_ps = (s - m_s) - jnp.log(z_s)

    # KLDivLoss(reduction='batchmean', log_target=False)
    kl = jnp.sum(p_t * (log_pt - log_ps)) / batch

    # hard_label = argmax(teacher, dim=1)  (first occurrence on ties)
    iota = lax.broadcasted_iota(jnp.int32, (batch, num_classes), 1)
    hit = jnp.where(t == m_t, iota, num_classes)
    hard = jnp.min(hit, axis=1, keepdims=True)
    onehot = (iota == hard).astype(jnp.float32)
    ce = -jnp.sum(onehot * log_ps) / batch

    o_ref[0, 0] = alpha * kl + (1.0 - alpha) * ce


def _kd_loss(teacher_out, student_out, alpha):
    out = pl.pallas_call(
        functools.partial(_kd_kernel, alpha=alpha),
        out_shape=jax.ShapeDtypeStruct((1, 1), jnp.float32),
        in_specs=[pl.BlockSpec(memory_space=pltpu.VMEM),
                  pl.BlockSpec(memory_space=pltpu.VMEM)],
        out_specs=pl.BlockSpec(memory_space=pltpu.SMEM),
    )(teacher_out, student_out)
    return out[0, 0]


# ---------------------------------------------------------------------------
# AttentionAwareKDLoss.forward
# ---------------------------------------------------------------------------
def attention_aware_kd_loss(teacher_out, teacher_layers, student_out,
                            student_layers, llambda=LLAMBDA, alpha=ALPHA):
    # Group same-shape layer pairs so each group runs as one fused pallas_call.
    groups = {}
    for t_layer, s_layer in zip(teacher_layers, student_layers):
        b = t_layer.shape[0]
        d = math.prod(t_layer.shape[1:])
        key = (b, d, jnp.dtype(t_layer.dtype), jnp.dtype(s_layer.dtype))
        groups.setdefault(key, []).append(
            (t_layer.reshape(b, d), s_layer.reshape(b, d)))

    at_loss = jnp.float32(0.0)
    for _, pairs in groups.items():
        t_stack = jnp.stack([p[0] for p in pairs])   # [L, B, D]
        s_stack = jnp.stack([p[1] for p in pairs])
        at_loss = at_loss + jnp.sum(_at_loss_per_layer(t_stack, s_stack))

    kd = _kd_loss(teacher_out, student_out, alpha)
    return (1.0 - llambda) * at_loss + llambda * kd


def _reference_loss(teacher_out, teacher_layers, student_out, student_layers,
                    llambda=LLAMBDA, alpha=ALPHA):
    """Pure-JAX reference mirroring the PyTorch semantics (validation)."""
    def ls(x):
        return jax.nn.log_softmax(x, axis=1)

    at = jnp.float32(0.0)
    for t, s in zip(teacher_layers, student_layers):
        tf = t.reshape(t.shape[0], -1)
        sf = s.reshape(s.shape[0], -1)
        lpt, lps = ls(tf), ls(sf)
        at = at + jnp.sum(jnp.exp(lpt) * (lpt - lps)) / tf.shape[0]

    lpt, lps = ls(teacher_out), ls(student_out)
    kl = jnp.sum(jnp.exp(lpt) * (lpt - lps)) / teacher_out.shape[0]
    hard = jnp.argmax(teacher_out, axis=1)
    ce = -jnp.mean(jnp.take_along_axis(lps, hard[:, None], axis=1))
    kd = alpha * kl + (1.0 - alpha) * ce
    return (1.0 - llambda) * at + llambda * kd


if __name__ == "__main__":
    key = jax.random.PRNGKey(0)
    k1, k2, k3, k4, k5, k6 = jax.random.split(key, 6)

    batch, num_classes = 2, 4
    chan, spatial = 4, 8   # layer feature maps: [B, C, H, W] = [2, 4, 8, 8]

    teacher_out = jax.random.normal(k1, (batch, num_classes), dtype=jnp.float32)
    student_out = jax.random.normal(k2, (batch, num_classes), dtype=jnp.float32)

    teacher_layers = [
        jax.random.normal(k3, (batch, chan, spatial, spatial), dtype=jnp.float32),
        jax.random.normal(k4, (batch, chan, spatial, spatial), dtype=jnp.float32),
    ]
    student_layers = [
        jax.random.normal(k5, (batch, chan, spatial, spatial), dtype=jnp.float32),
        jax.random.normal(k6, (batch, chan, spatial, spatial), dtype=jnp.float32),
    ]

    loss_fn = jax.jit(attention_aware_kd_loss)
    loss = jax.block_until_ready(
        loss_fn(teacher_out, teacher_layers, student_out, student_layers))

    ref = jax.block_until_ready(
        _reference_loss(teacher_out, teacher_layers, student_out, student_layers))

    assert jnp.allclose(loss, ref, rtol=1e-5, atol=1e-5), (loss, ref)
    print("KERNEL_OK")
</pallas_src>

<mosaic_0001>
module attributes {stable_mosaic.version = 11 : i64} {
  func.func @_at_layers_kernel(%arg0: i32, %arg1: i32, %arg2: memref<1x2x8x128xf32, #tpu.memory_space<vmem>>, %arg3: memref<1x2x8x128xf32, #tpu.memory_space<vmem>>, %arg4: memref<1x8x128xf32, #tpu.memory_space<vmem>>, %arg5: memref<2x1x128xf32, #tpu.memory_space<vmem>>, %arg6: memref<2x1x128xf32, #tpu.memory_space<vmem>>, %arg7: memref<2x1x128xf32, #tpu.memory_space<vmem>>, %arg8: memref<2x1x128xf32, #tpu.memory_space<vmem>>, %arg9: memref<2x1x128xf32, #tpu.memory_space<vmem>>) attributes {dimension_semantics = [#tpu.dimension_semantics<parallel>, #tpu.dimension_semantics<arbitrary>], iteration_bounds = array<i64: 2, 1>, scalar_prefetch = 0 : i64, scratch_operands = 5 : i64, tpu.core_type = #tpu.core_type<tc>, window_params = [{transform_indices = @transform_0, window_bounds = array<i64: 1, 2, 8, 128>}, {transform_indices = @transform_1, window_bounds = array<i64: 1, 2, 8, 128>}, {transform_indices = @transform_2, window_bounds = array<i64: 1, 8, 128>}]} {
    %c0_i32 = arith.constant 0 : i32
    %0 = arith.cmpi eq, %arg1, %c0_i32 : i32
    %1 = arith.extui %0 : i1 to i32
    %c0_i32_0 = arith.constant 0 : i32
    %2 = arith.cmpi ne, %1, %c0_i32_0 : i32
    scf.if %2 {
      %cst_50 = arith.constant -1.000000e+30 : f32
      %52 = vector.broadcast %cst_50 : f32 to vector<2x1x128xf32>
      %c0_51 = arith.constant 0 : index
      %c0_52 = arith.constant 0 : index
      %c0_53 = arith.constant 0 : index
      %53 = vector.load %arg5[%c0_51, %c0_52, %c0_53] : memref<2x1x128xf32, #tpu.memory_space<vmem>>, vector<2x1x128xf32>
      tpu.vector_store %arg5[%c0_51, %c0_52, %c0_53], %52 {strides = array<i32>} : memref<2x1x128xf32, #tpu.memory_space<vmem>>, vector<2x1x128xf32>,
      %cst_54 = arith.constant -1.000000e+30 : f32
      %54 = vector.broadcast %cst_54 : f32 to vector<2x1x128xf32>
      %c0_55 = arith.constant 0 : index
      %c0_56 = arith.constant 0 : index
      %c0_57 = arith.constant 0 : index
      %55 = vector.load %arg8[%c0_55, %c0_56, %c0_57] : memref<2x1x128xf32, #tpu.memory_space<vmem>>, vector<2x1x128xf32>
      tpu.vector_store %arg8[%c0_55, %c0_56, %c0_57], %54 {strides = array<i32>} : memref<2x1x128xf32, #tpu.memory_space<vmem>>, vector<2x1x128xf32>,
      %cst_58 = arith.constant 0.000000e+00 : f32
      %56 = vector.broadcast %cst_58 : f32 to vector<2x1x128xf32>
      %c0_59 = arith.constant 0 : index
      %c0_60 = arith.constant 0 : index
      %c0_61 = arith.constant 0 : index
      %57 = vector.load %arg6[%c0_59, %c0_60, %c0_61] : memref<2x1x128xf32, #tpu.memory_space<vmem>>, vector<2x1x128xf32>
      tpu.vector_store %arg6[%c0_59, %c0_60, %c0_61], %56 {strides = array<i32>} : memref<2x1x128xf32, #tpu.memory_space<vmem>>, vector<2x1x128xf32>,
      %cst_62 = arith.constant 0.000000e+00 : f32
      %58 = vector.broadcast %cst_62 : f32 to vector<2x1x128xf32>
      %c0_63 = arith.constant 0 : index
      %c0_64 = arith.constant 0 : index
      %c0_65 = arith.constant 0 : index
      %59 = vector.load %arg9[%c0_63, %c0_64, %c0_65] : memref<2x1x128xf32, #tpu.memory_space<vmem>>, vector<2x1x128xf32>
      tpu.vector_store %arg9[%c0_63, %c0_64, %c0_65], %58 {strides = array<i32>} : memref<2x1x128xf32, #tpu.memory_space<vmem>>, vector<2x1x128xf32>,
      %cst_66 = arith.constant 0.000000e+00 : f32
      %60 = vector.broadcast %cst_66 : f32 to vector<2x1x128xf32>
      %c0_67 = arith.constant 0 : index
      %c0_68 = arith.constant 0 : index
      %c0_69 = arith.constant 0 : index
      %61 = vector.load %arg7[%c0_67, %c0_68, %c0_69] : memref<2x1x128xf32, #tpu.memory_space<vmem>>, vector<2x1x128xf32>
      tpu.vector_store %arg7[%c0_67, %c0_68, %c0_69], %60 {strides = array<i32>} : memref<2x1x128xf32, #tpu.memory_space<vmem>>, vector<2x1x128xf32>,
    } else {
    }
    %c0 = arith.constant 0 : index
    %c0_1 = arith.constant 0 : index
    %c0_2 = arith.constant 0 : index
    %c0_3 = arith.constant 0 : index
    %3 = vector.load %arg2[%c0, %c0_1, %c0_2, %c0_3] : memref<1x2x8x128xf32, #tpu.memory_space<vmem>>, vector<1x2x8x128xf32>
    %4 = vector.shape_cast %3 : vector<1x2x8x128xf32> to vector<2x8x128xf32>
    %c0_4 = arith.constant 0 : index
    %c0_5 = arith.constant 0 : index
    %c0_6 = arith.constant 0 : index
    %c0_7 = arith.constant 0 : index
    %5 = vector.load %arg3[%c0_4, %c0_5, %c0_6, %c0_7] : memref<1x2x8x128xf32, #tpu.memory_space<vmem>>, vector<1x2x8x128xf32>
    %6 = vector.shape_cast %5 : vector<1x2x8x128xf32> to vector<2x8x128xf32>
    %cst = arith.constant dense<0xFF800000> : vector<2x128xf32>
    %7 = vector.multi_reduction <maximumf>, %4, %cst [1] : vector<2x8x128xf32> to vector<2x128xf32>
    %8 = vector.shape_cast %7 : vector<2x128xf32> to vector<2x1x128xf32>
    %c0_8 = arith.constant 0 : index
    %c0_9 = arith.constant 0 : index
    %c0_10 = arith.constant 0 : index
    %9 = vector.load %arg5[%c0_8, %c0_9, %c0_10] : memref<2x1x128xf32, #tpu.memory_space<vmem>>, vector<2x1x128xf32>
    %10 = arith.maximumf %9, %8 : vector<2x1x128xf32>
    %c0_11 = arith.constant 0 : index
    %c0_12 = arith.constant 0 : index
    %c0_13 = arith.constant 0 : index
    %11 = vector.load %arg5[%c0_11, %c0_12, %c0_13] : memref<2x1x128xf32, #tpu.memory_space<vmem>>, vector<2x1x128xf32>
    %12 = arith.subf %11, %10 : vector<2x1x128xf32>
    %13 = math.exp %12 : vector<2x1x128xf32>
    %14 = vector.broadcast %10 : vector<2x1x128xf32> to vector<2x8x128xf32>
    %15 = arith.subf %4, %14 : vector<2x8x128xf32>
    %16 = math.exp %15 : vector<2x8x128xf32>
    %c0_14 = arith.constant 0 : index
    %c0_15 = arith.constant 0 : index
    %c0_16 = arith.constant 0 : index
    %17 = vector.load %arg6[%c0_14, %c0_15, %c0_16] : memref<2x1x128xf32, #tpu.memory_space<vmem>>, vector<2x1x128xf32>
    %18 = arith.mulf %17, %13 : vector<2x1x128xf32>
    %cst_17 = arith.constant dense<0.000000e+00> : vector<2x128xf32>
    %19 = vector.multi_reduction <add>, %16, %cst_17 [1] : vector<2x8x128xf32> to vector<2x128xf32>
    %20 = vector.shape_cast %19 : vector<2x128xf32> to vector<2x1x128xf32>
    %21 = arith.addf %18, %20 : vector<2x1x128xf32>
    %c0_18 = arith.constant 0 : index
    %c0_19 = arith.constant 0 : index
    %c0_20 = arith.constant 0 : index
    %22 = vector.load %arg6[%c0_18, %c0_19, %c0_20] : memref<2x1x128xf32, #tpu.memory_space<vmem>>, vector<2x1x128xf32>
    tpu.vector_store %arg6[%c0_18, %c0_19, %c0_20], %21 {strides = array<i32>} : memref<2x1x128xf32, #tpu.memory_space<vmem>>, vector<2x1x128xf32>,
    %c0_21 = arith.constant 0 : index
    %c0_22 = arith.constant 0 : index
    %c0_23 = arith.constant 0 : index
    %23 = vector.load %arg7[%c0_21, %c0_22, %c0_23] : memref<2x1x128xf32, #tpu.memory_space<vmem>>, vector<2x1x128xf32>
    %24 = arith.mulf %23, %13 : vector<2x1x128xf32>
    %25 = arith.subf %4, %6 : vector<2x8x128xf32>
    %26 = arith.mulf %16, %25 : vector<2x8x128xf32>
    %cst_24 = arith.constant dense<0.000000e+00> : vector<2x128xf32>
    %27 = vector.multi_reduction <add>, %26, %cst_24 [1] : vector<2x8x128xf32> to vector<2x128xf32>
    %28 = vector.shape_cast %27 : vector<2x128xf32> to vector<2x1x128xf32>
    %29 = arith.addf %24, %28 : vector<2x1x128xf32>
    %c0_25 = arith.constant 0 : index
    %c0_26 = arith.constant 0 : index
    %c0_27 = arith.constant 0 : index
    %30 = vector.load %arg7[%c0_25, %c0_26, %c0_27] : memref<2x1x128xf32, #tpu.memory_space<vmem>>, vector<2x1x128xf32>
    tpu.vector_store %arg7[%c0_25, %c0_26, %c0_27], %29 {strides = array<i32>} : memref<2x1x128xf32, #tpu.memory_space<vmem>>, vector<2x1x128xf32>,
    %c0_28 = arith.constant 0 : index
    %c0_29 = arith.constant 0 : index
    %c0_30 = arith.constant 0 : index
    %31 = vector.load %arg5[%c0_28, %c0_29, %c0_30] : memref<2x1x128xf32, #tpu.memory_space<vmem>>, vector<2x1x128xf32>
    tpu.vector_store %arg5[%c0_28, %c0_29, %c0_30], %10 {strides = array<i32>} : memref<2x1x128xf32, #tpu.memory_space<vmem>>, vector<2x1x128xf32>,
    %cst_31 = arith.constant dense<0xFF800000> : vector<2x128xf32>
    %32 = vector.multi_reduction <maximumf>, %6, %cst_31 [1] : vector<2x8x128xf32> to vector<2x128xf32>
    %33 = vector.shape_cast %32 : vector<2x128xf32> to vector<2x1x128xf32>
    %c0_32 = arith.constant 0 : index
    %c0_33 = arith.constant 0 : index
    %c0_34 = arith.constant 0 : index
    %34 = vector.load %arg8[%c0_32, %c0_33, %c0_34] : memref<2x1x128xf32, #tpu.memory_space<vmem>>, vector<2x1x128xf32>
    %35 = arith.maximumf %34, %33 : vector<2x1x128xf32>
    %c0_35 = arith.constant 0 : index
    %c0_36 = arith.constant 0 : index
    %c0_37 = arith.constant 0 : index
    %36 = vector.load %arg8[%c0_35, %c0_36, %c0_37] : memref<2x1x128xf32, #tpu.memory_space<vmem>>, vector<2x1x128xf32>
    %37 = arith.subf %36, %35 : vector<2x1x128xf32>
    %38 = math.exp %37 : vector<2x1x128xf32>
    %39 = vector.broadcast %35 : vector<2x1x128xf32> to vector<2x8x128xf32>
    %40 = arith.subf %6, %39 : vector<2x8x128xf32>
    %41 = math.exp %40 : vector<2x8x128xf32>
    %c0_38 = arith.constant 0 : index
    %c0_39 = arith.constant 0 : index
    %c0_40 = arith.constant 0 : index
    %42 = vector.load %arg9[%c0_38, %c0_39, %c0_40] : memref<2x1x128xf32, #tpu.memory_space<vmem>>, vector<2x1x128xf32>
    %43 = arith.mulf %42, %38 : vector<2x1x128xf32>
    %cst_41 = arith.constant dense<0.000000e+00> : vector<2x128xf32>
    %44 = vector.multi_reduction <add>, %41, %cst_41 [1] : vector<2x8x128xf32> to vector<2x128xf32>
    %45 = vector.shape_cast %44 : vector<2x128xf32> to vector<2x1x128xf32>
    %46 = arith.addf %43, %45 : vector<2x1x128xf32>
    %c0_42 = arith.constant 0 : index
    %c0_43 = arith.constant 0 : index
    %c0_44 = arith.constant 0 : index
    %47 = vector.load %arg9[%c0_42, %c0_43, %c0_44] : memref<2x1x128xf32, #tpu.memory_space<vmem>>, vector<2x1x128xf32>
    tpu.vector_store %arg9[%c0_42, %c0_43, %c0_44], %46 {strides = array<i32>} : memref<2x1x128xf32, #tpu.memory_space<vmem>>, vector<2x1x128xf32>,
    %c0_45 = arith.constant 0 : index
    %c0_46 = arith.constant 0 : index
    %c0_47 = arith.constant 0 : index
    %48 = vector.load %arg8[%c0_45, %c0_46, %c0_47] : memref<2x1x128xf32, #tpu.memory_space<vmem>>, vector<2x1x128xf32>
    tpu.vector_store %arg8[%c0_45, %c0_46, %c0_47], %35 {strides = array<i32>} : memref<2x1x128xf32, #tpu.memory_space<vmem>>, vector<2x1x128xf32>,
    %c0_i32_48 = arith.constant 0 : i32
    %49 = arith.cmpi eq, %arg1, %c0_i32_48 : i32
    %50 = arith.extui %49 : i1 to i32
    %c0_i32_49 = arith.constant 0 : i32
    %51 = arith.cmpi ne, %50, %c0_i32_49 : i32
    scf.if %51 {
      %c0_50 = arith.constant 0 : index
      %c0_51 = arith.constant 0 : index
      %c0_52 = arith.constant 0 : index
      %52 = vector.load %arg5[%c0_50, %c0_51, %c0_52] : memref<2x1x128xf32, #tpu.memory_space<vmem>>, vector<2x1x128xf32>
      %c0_53 = arith.constant 0 : index
      %c0_54 = arith.constant 0 : index
      %c0_55 = arith.constant 0 : index
      %53 = vector.load %arg8[%c0_53, %c0_54, %c0_55] : memref<2x1x128xf32, #tpu.memory_space<vmem>>, vector<2x1x128xf32>
      %cst_56 = arith.constant dense<0xFF800000> : vector<2x1xf32>
      %54 = vector.multi_reduction <maximumf>, %52, %cst_56 [2] : vector<2x1x128xf32> to vector<2x1xf32>
      %55 = vector.shape_cast %54 : vector<2x1xf32> to vector<2x1x1xf32>
      %cst_57 = arith.constant dense<0xFF800000> : vector<2x1xf32>
      %56 = vector.multi_reduction <maximumf>, %53, %cst_57 [2] : vector<2x1x128xf32> to vector<2x1xf32>
      %57 = vector.shape_cast %56 : vector<2x1xf32> to vector<2x1x1xf32>
      %58 = vector.broadcast %55 : vector<2x1x1xf32> to vector<2x1x128xf32>
      %59 = arith.subf %52, %58 : vector<2x1x128xf32>
      %60 = math.exp %59 : vector<2x1x128xf32>
      %61 = vector.broadcast %57 : vector<2x1x1xf32> to vector<2x1x128xf32>
      %62 = arith.subf %53, %61 : vector<2x1x128xf32>
      %63 = math.exp %62 : vector<2x1x128xf32>
      %c0_58 = arith.constant 0 : index
      %c0_59 = arith.constant 0 : index
      %c0_60 = arith.constant 0 : index
      %64 = vector.load %arg6[%c0_58, %c0_59, %c0_60] : memref<2x1x128xf32, #tpu.memory_space<vmem>>, vector<2x1x128xf32>
      %65 = arith.mulf %64, %60 : vector<2x1x128xf32>
      %cst_61 = arith.constant dense<0.000000e+00> : vector<2x1xf32>
      %66 = vector.multi_reduction <add>, %65, %cst_61 [2] : vector<2x1x128xf32> to vector<2x1xf32>
      %67 = vector.shape_cast %66 : vector<2x1xf32> to vector<2x1x1xf32>
      %c0_62 = arith.constant 0 : index
      %c0_63 = arith.constant 0 : index
      %c0_64 = arith.constant 0 : index
      %68 = vector.load %arg9[%c0_62, %c0_63, %c0_64] : memref<2x1x128xf32, #tpu.memory_space<vmem>>, vector<2x1x128xf32>
      %69 = arith.mulf %68, %63 : vector<2x1x128xf32>
      %cst_65 = arith.constant dense<0.000000e+00> : vector<2x1xf32>
      %70 = vector.multi_reduction <add>, %69, %cst_65 [2] : vector<2x1x128xf32> to vector<2x1xf32>
      %71 = vector.shape_cast %70 : vector<2x1xf32> to vector<2x1x1xf32>
      %c0_66 = arith.constant 0 : index
      %c0_67 = arith.constant 0 : index
      %c0_68 = arith.constant 0 : index
      %72 = vector.load %arg7[%c0_66, %c0_67, %c0_68] : memref<2x1x128xf32, #tpu.memory_space<vmem>>, vector<2x1x128xf32>
      %73 = arith.mulf %72, %60 : vector<2x1x128xf32>
      %cst_69 = arith.constant dense<0.000000e+00> : vector<2x1xf32>
      %74 = vector.multi_reduction <add>, %73, %cst_69 [2] : vector<2x1x128xf32> to vector<2x1xf32>
      %75 = vector.shape_cast %74 : vector<2x1xf32> to vector<2x1x1xf32>
      %76 = arith.divf %75, %67 : vector<2x1x1xf32>
      %77 = math.log %71 : vector<2x1x1xf32>
      %78 = arith.addf %57, %77 : vector<2x1x1xf32>
      %79 = arith.addf %76, %78 : vector<2x1x1xf32>
      %80 = math.log %67 : vector<2x1x1xf32>
      %81 = arith.addf %55, %80 : vector<2x1x1xf32>
      %82 = arith.subf %79, %81 : vector<2x1x1xf32>
      %83 = vector.shape_cast %82 : vector<2x1x1xf32> to vector<1x2x1x1xf32>
      %cst_70 = arith.constant dense<0.000000e+00> : vector<1xf32>
      %84 = vector.multi_reduction <add>, %83, %cst_70 [1, 2, 3] : vector<1x2x1x1xf32> to vector<1xf32>
      %85 = vector.shape_cast %84 : vector<1xf32> to vector<1x1x1x1xf32>
      %86 = vector.extract %85[0, 0, 0, 0] : f32 from vector<1x1x1x1xf32>
      %cst_71 = arith.constant 2.000000e+00 : f32
      %87 = arith.divf %86, %cst_71 : f32
      %88 = vector.broadcast %87 : f32 to vector<1x1xf32>
      %89 = vector.shape_cast %88 : vector<1x1xf32> to vector<1x1xf32>
      %90 = vector.broadcast %89 : vector<1x1xf32> to vector<8x128xf32>
      %c0_72 = arith.constant 0 : index
      %c0_73 = arith.constant 0 : index
      %c0_74 = arith.constant 0 : index
      %91 = vector.load %arg4[%c0_72, %c0_73, %c0_74] : memref<1x8x128xf32, #tpu.memory_space<vmem>>, vector<1x8x128xf32>
      %92 = vector.shape_cast %91 : vector<1x8x128xf32> to vector<8x128xf32>
      %93 = vector.shape_cast %90 : vector<8x128xf32> to vector<1x8x128xf32>
      tpu.vector_store %arg4[%c0_72, %c0_73, %c0_74], %93 {strides = array<i32>} : memref<1x8x128xf32, #tpu.memory_space<vmem>>, vector<1x8x128xf32>,
    } else {
    }
    return
  }
  func.func @transform_0(%arg0: i32, %arg1: i32) -> (i32, i32, i32, i32) {
    %c0_i32 = arith.constant 0 : i32
    %c0_i32_0 = arith.constant 0 : i32
    %c0_i32_1 = arith.constant 0 : i32
    return %arg0, %c0_i32, %arg1, %c0_i32_0 : i32, i32, i32, i32
  }
  func.func @transform_1(%arg0: i32, %arg1: i32) -> (i32, i32, i32, i32) {
    %c0_i32 = arith.constant 0 : i32
    %c0_i32_0 = arith.constant 0 : i32
    %c0_i32_1 = arith.constant 0 : i32
    return %arg0, %c0_i32, %arg1, %c0_i32_0 : i32, i32, i32, i32
  }
  func.func @transform_2(%arg0: i32, %arg1: i32) -> (i32, i32, i32) {
    %c0_i32 = arith.constant 0 : i32
    %c0_i32_0 = arith.constant 0 : i32
    %c0_i32_1 = arith.constant 0 : i32
    return %arg0, %c0_i32, %c0_i32_0 : i32, i32, i32
  }
}

module attributes {stable_mosaic.version = 11 : i64} {
  func.func @_kd_kernel(%arg0: memref<2x4xf32, #tpu.memory_space<vmem>>, %arg1: memref<2x4xf32, #tpu.memory_space<vmem>>, %arg2: memref<1x1xf32, #tpu.memory_space<smem>>) attributes {dimension_semantics = [], scalar_prefetch = 0 : i64, scratch_operands = 0 : i64, tpu.core_type = #tpu.core_type<tc>} {
    %c0 = arith.constant 0 : index
    %c0_0 = arith.constant 0 : index
    %0 = vector.load %arg0[%c0, %c0_0] : memref<2x4xf32, #tpu.memory_space<vmem>>, vector<2x4xf32>
    %c0_1 = arith.constant 0 : index
    %c0_2 = arith.constant 0 : index
    %1 = vector.load %arg1[%c0_1, %c0_2] : memref<2x4xf32, #tpu.memory_space<vmem>>, vector<2x4xf32>
    %cst = arith.constant dense<0xFF800000> : vector<2xf32>
    %2 = vector.multi_reduction <maximumf>, %0, %cst [1] : vector<2x4xf32> to vector<2xf32>
    %3 = vector.shape_cast %2 : vector<2xf32> to vector<2x1xf32>
    %4 = vector.broadcast %3 : vector<2x1xf32> to vector<2x4xf32>
    %5 = arith.subf %0, %4 : vector<2x4xf32>
    %6 = math.exp %5 : vector<2x4xf32>
    %cst_3 = arith.constant dense<0.000000e+00> : vector<2xf32>
    %7 = vector.multi_reduction <add>, %6, %cst_3 [1] : vector<2x4xf32> to vector<2xf32>
    %8 = vector.shape_cast %7 : vector<2xf32> to vector<2x1xf32>
    %9 = vector.broadcast %3 : vector<2x1xf32> to vector<2x4xf32>
    %10 = arith.subf %0, %9 : vector<2x4xf32>
    %11 = math.log %8 : vector<2x1xf32>
    %12 = vector.broadcast %11 : vector<2x1xf32> to vector<2x4xf32>
    %13 = arith.subf %10, %12 : vector<2x4xf32>
    %14 = vector.broadcast %8 : vector<2x1xf32> to vector<2x4xf32>
    %15 = arith.divf %6, %14 : vector<2x4xf32>
    %cst_4 = arith.constant dense<0xFF800000> : vector<2xf32>
    %16 = vector.multi_reduction <maximumf>, %1, %cst_4 [1] : vector<2x4xf32> to vector<2xf32>
    %17 = vector.shape_cast %16 : vector<2xf32> to vector<2x1xf32>
    %18 = vector.broadcast %17 : vector<2x1xf32> to vector<2x4xf32>
    %19 = arith.subf %1, %18 : vector<2x4xf32>
    %20 = math.exp %19 : vector<2x4xf32>
    %cst_5 = arith.constant dense<0.000000e+00> : vector<2xf32>
    %21 = vector.multi_reduction <add>, %20, %cst_5 [1] : vector<2x4xf32> to vector<2xf32>
    %22 = vector.shape_cast %21 : vector<2xf32> to vector<2x1xf32>
    %23 = vector.broadcast %17 : vector<2x1xf32> to vector<2x4xf32>
    %24 = arith.subf %1, %23 : vector<2x4xf32>
    %25 = math.log %22 : vector<2x1xf32>
    %26 = vector.broadcast %25 : vector<2x1xf32> to vector<2x4xf32>
    %27 = arith.subf %24, %26 : vector<2x4xf32>
    %28 = arith.subf %13, %27 : vector<2x4xf32>
    %29 = arith.mulf %15, %28 : vector<2x4xf32>
    %30 = vector.shape_cast %29 : vector<2x4xf32> to vector<1x2x4xf32>
    %cst_6 = arith.constant dense<0.000000e+00> : vector<1xf32>
    %31 = vector.multi_reduction <add>, %30, %cst_6 [1, 2] : vector<1x2x4xf32> to vector<1xf32>
    %32 = vector.shape_cast %31 : vector<1xf32> to vector<1x1x1xf32>
    %33 = vector.extract %32[0, 0, 0] : f32 from vector<1x1x1xf32>
    %cst_7 = arith.constant 2.000000e+00 : f32
    %34 = arith.divf %33, %cst_7 : f32
    %35 = tpu.iota {dimensions = array<i32: 1>} : vector<2x4xi32>
    %36 = vector.broadcast %3 : vector<2x1xf32> to vector<2x4xf32>
    %37 = arith.cmpf oeq, %0, %36 : vector<2x4xf32>
    %c4_i32 = arith.constant 4 : i32
    %38 = vector.broadcast %c4_i32 : i32 to vector<2x4xi32>
    %39 = arith.select %37, %35, %38 : vector<2x4xi1>, vector<2x4xi32>
    %cst_8 = arith.constant dense<2147483647> : vector<2xi32>
    %40 = vector.multi_reduction <minsi>, %39, %cst_8 [1] : vector<2x4xi32> to vector<2xi32>
    %41 = vector.shape_cast %40 : vector<2xi32> to vector<2x1xi32>
    %42 = vector.broadcast %41 : vector<2x1xi32> to vector<2x4xi32>
    %43 = arith.cmpi eq, %35, %42 : vector<2x4xi32>
    %44 = arith.extui %43 : vector<2x4xi1> to vector<2x4xi32>
    %45 = arith.sitofp %44 : vector<2x4xi32> to vector<2x4xf32>
    %46 = arith.mulf %45, %27 : vector<2x4xf32>
    %47 = vector.shape_cast %46 : vector<2x4xf32> to vector<1x2x4xf32>
    %cst_9 = arith.constant dense<0.000000e+00> : vector<1xf32>
    %48 = vector.multi_reduction <add>, %47, %cst_9 [1, 2] : vector<1x2x4xf32> to vector<1xf32>
    %49 = vector.shape_cast %48 : vector<1xf32> to vector<1x1x1xf32>
    %50 = vector.extract %49[0, 0, 0] : f32 from vector<1x1x1xf32>
    %cst_10 = arith.constant 0.000000e+00 : f32
    %51 = arith.subf %cst_10, %50 : f32
    %cst_11 = arith.constant 2.000000e+00 : f32
    %52 = arith.divf %51, %cst_11 : f32
    %cst_12 = arith.constant 0.899999976 : f32
    %53 = arith.mulf %cst_12, %34 : f32
    %cst_13 = arith.constant 1.000000e-01 : f32
    %54 = arith.mulf %cst_13, %52 : f32
    %55 = arith.addf %53, %54 : f32
    %c0_14 = arith.constant 0 : index
    %c0_15 = arith.constant 0 : index
    %56 = memref.load %arg2[%c0_14, %c0_15] : memref<1x1xf32, #tpu.memory_space<smem>>
    memref.store %55, %arg2[%c0_14, %c0_15] : memref<1x1xf32, #tpu.memory_space<smem>>
    return
  }
}

</mosaic_0001>

<bundles_post_ra>
// kernel: attention_aware_kd_loss.3
= control target key start
LH: loop header
LB: loop body
LE: loop exit
PB: predicated region body
PF: predicated region fallthrough
CT: control target
= control target key end

     0   :  { %vm14_vm0 = vcmask 25600   ;;  %s182_s0 = inlined_call_operand.vmem [shape: f32[2,4], index: 0, kind: input, shape index: {}]   ;;  %s183_s1 = inlined_call_operand.vmem [shape: f32[2,4], index: 1, kind: input, shape index: {}]   ;;  %s184_s2 = inlined_call_operand.hbm [shape: f32[1,1], index: 2, kind: output, shape index: {}]  }
   0x1   :  { %v12_v0 = vld [vmem:[%s182_s0] sm:$0x3] }
   0x2   :  { %v13_v1 = vld [vmem:[%s183_s1] sm:$0x3]  ;;  %v15_v2 = vsel %vm14_vm0, %v12_v0, -inf }
   0x3   :  { %7 = vsyncpa [#allocation3], 0  ;;  %16 = vmax.xlane.f32.xlu0 %v15_v2  ;;  %v29_v3 = vsel %vm14_vm0, %v13_v1, -inf  ;;  %v56_v4 = vlaneseq  ;;  %v140_v42 = vmov 0.0   ;;  %s128_s21 = scalar_lea.hbm %s184_s2, 16 }
   0x4   :  { %p129_p0 = scmp.ne.s32.totalorder %s184_s2, %s128_s21  ;;  %p132_p1 = scmp.lt.u32.totalorder %s128_s21, %s184_s2 }
   0x5   :  { %v57_v5 = vand.u32 127, %v56_v4 }
   0x6   :  { %p134_p2 = pnand %p132_p1, %p129_p0 }
   0x7   :  { %30 = vmax.xlane.f32.xlu0 %v29_v3 }
  0x90   :  { %v17_v6 = vpop.xlane.xlu0 %16 }
  0x91   :  { %v18_v7 = vsub.f32 %v12_v0, %v17_v6  ;;  %vm58_vm1 = vcmp.eq.f32.partialorder %v12_v0, %v17_v6 }
  0x92   :  { %v59_v8 = vsel %vm58_vm1, %v57_v5, 4 }
  0x93   :  { %v19_v9 = vmul.f32 1.442695, %v18_v7  ;;  %v60_v10 = vsel %vm14_vm0, %v59_v8, 2147483647 }
  0x94   :  { %v31_v11 = vpop.xlane.xlu0 %30  ;;  %v62_v12 = vshra.s32 %v60_v10, 16  ;;  %v61_v20 = vand.u32 65535, %v60_v10 }
  0x95   :  { %118 = vpow2.f32 %v19_v9  ;;  %v32_v13 = vsub.f32 %v13_v1, %v31_v11 }
  0x96   :  { %v64_v14 = vcvt.s32.f32 %v62_v12  ;;  %v63_v22 = vcvt.s32.f32 %v61_v20 }
  0x97   :  { %v33_v15 = vmul.f32 1.442695, %v32_v13 }
  0x98   :  { %65 = vmin.xlane.f32.xlu1 %v64_v14 }
  0x99   :  { %120 = vpow2.f32 %v33_v15 }
  0x9f   :  { %v119_v16 = vpop.eup %118 }
  0xa0   :  { %v21_v17 = vsel %vm14_vm0, %v119_v16, 0.0 }
  0xa1   :  { %22 = vadd.xlane.f32.xlu1 %v21_v17 }
  0xa3   :  { %v121_v18 = vpop.eup %120 }
  0xa4   :  { %v35_v19 = vsel %vm14_vm0, %v121_v18, 0.0 }
  0xa5   :  { %36 = vadd.xlane.f32.xlu0 %v35_v19 }
 0x125   :  { %v66_v21 = vpop.xlane.xlu1 %65 }
 0x126   :  { %vm67_vm2 = vcmp.eq.f32.partialorder %v64_v14, %v66_v21  ;;  %v72_v37 = vcvt.f32.s32 %v66_v21 }
 0x127   :  { %v68_v23 = vsel %vm67_vm2, %v63_v22, inf }
 0x128   :  { %69 = vmin.xlane.f32.xlu1 %v68_v23  ;;  %v73_v39 = vshll.u32 %v72_v37, 16 }
 0x12e   :  { %v23_v24 = vpop.xlane.xlu1 %22 }
 0x12f   :  { %122 = vlog2.f32 %v23_v24 }
 0x132   :  { %v37_v25 = vpop.xlane.xlu0 %36 }
 0x133   :  { %124 = vlog2.f32 %v37_v25 }
 0x134   :  { %126 = vrcp.f32 %v23_v24 }
 0x139   :  { %v123_v26 = vpop.eup %122 }
 0x13a   :  { %v25_v27 = vmul.f32 0.6931472, %v123_v26 }
 0x13c   :  { %v26_v32 = vsub.f32 %v18_v7, %v25_v27 }
 0x13d   :  { %v125_v28 = vpop.eup %124 }
 0x13e   :  { %v39_v29 = vmul.f32 0.6931472, %v125_v28  ;;  %v127_v30 = vpop.eup %126 }
 0x13f   :  { %v28_v33 = vmul.f32 %v127_v30, %v119_v16 }
 0x140   :  { %v40_v31 = vsub.f32 %v32_v13, %v39_v29 }
 0x142   :  { %v41_v34 = vsub.f32 %v26_v32, %v40_v31 }
 0x144   :  { %v42_v35 = vmul.f32 %v41_v34, %v28_v33 }
 0x146   :  { %v43_v36 = vsel %vm14_vm0, %v42_v35, 0.0 }
 0x147   :  { %44 = vadd.xlane.f32.xlu0 %v43_v36 }
 0x1b5   :  { %v70_v38 = vpop.xlane.xlu1 %69 }
 0x1b6   :  { %v71_v40 = vcvt.f32.s32 %v70_v38 }
 0x1b8   :  { %v74_v41 = vadd.s32 %v73_v39, %v71_v40 }
 0x1ba   :  { %vm75_vm3 = vcmp.eq.s32.totalorder %v57_v5, %v74_v41 }
 0x1bb   :  { %v111_v43 = vsel %vm75_vm3, 1.0, %v140_v42 }
 0x1bc   :  { %v78_v44 = vmul.f32 %v111_v43, %v40_v31 }
 0x1be   :  { %v79_v45 = vsel %vm14_vm0, %v78_v44, 0.0 }
 0x1bf   :  { %80 = vadd.xlane.f32.xlu1 %v79_v45 }
 0x1d4   :  { %v45_v46 = vpop.xlane.xlu0 %44 }
 0x1d5   :  { %v46_v47 = vrot.slane %v45_v46, 4 }
 0x1d7   :  { %v47_v48 = vadd.f32 %v46_v47, %v45_v46 }
 0x1d9   :  { %v48_v49 = vrot.slane %v47_v48, 2 }
 0x1db   :  { %v49_v50 = vadd.f32 %v48_v49, %v47_v48 }
 0x1dd   :  { %v50_v51 = vrot.slane %v49_v50, 1 }
 0x1df   :  { %v51_v52 = vadd.f32 %v50_v51, %v49_v50 }
 0x1e1   :  { %112 = vpush %v51_v52 }
 0x212   :  { %s113_s0 = spop %112 }
 0x213   :  { %s55_s1 = smul.f32 0.5, %s113_s0 }
 0x215   :  { %s93_s16 = smul.f32 0.9, %s55_s1 }
 0x24c   :  { %v81_v53 = vpop.xlane.xlu1 %80 }
 0x24d   :  { %v82_v54 = vrot.slane %v81_v53, 4 }
 0x24f   :  { %v83_v55 = vadd.f32 %v82_v54, %v81_v53 }
 0x251   :  { %v84_v56 = vrot.slane %v83_v55, 2 }
 0x253   :  { %v85_v57 = vadd.f32 %v84_v56, %v83_v55 }
 0x255   :  { %v86_v58 = vrot.slane %v85_v57, 1 }
 0x257   :  { %v87_v59 = vadd.f32 %v86_v58, %v85_v57 }
 0x259   :  { %114 = vpush %v87_v59 }
 0x28a   :  { %s115_s13 = spop %114 }
 0x28b   :  { %s89_s14 = ssub.f32 0.0, %s115_s13 }
 0x28d   :  { %s92_s15 = smul.f32 0.5, %s89_s14 }
 0x28f   :  { %s94_s17 = smul.f32 0.1, %s92_s15 }
 0x291   :  { %s95_s18 = sadd.f32 %s94_s17, %s93_s16 }
 0x293   :  { %97 = sst [smem:[#allocation2]] %s95_s18 }
 0x294   :  { %137 = shalt.err (!%p134_p2)
}
 0x295   :  { %s141_s26 = smov [#allocation2]  }
 0x296   :  { %105 = dma.smem_to_hbm %s141_s26, 16, %s184_s2, [#allocation3]  }
 0x297   :  { %138 = dma.done.wait [#allocation3], 16  }
 0x298   :  { %139 = vsyncadd [#allocation3], 4294967280 }
 0x299   :  { %109 = sfence }
 0x29a   :  { %110 = vsyncpa [#allocation3], 1 }

// kernel: attention_aware_kd_loss.2
= control target key start
LH: loop header
LB: loop body
LE: loop exit
PB: predicated region body
PF: predicated region fallthrough
CT: control target
= control target key end

     0   :  { %s666_s9 = smov 0   ;;  %s668_s10 = smov 0   ;;  %s764_s0 = inlined_call_operand.vmem [shape: f32[2,2,8,128], index: 0, kind: input, shape index: {}]   ;;  %s765_s1 = inlined_call_operand.vmem [shape: f32[2,2,8,128], index: 1, kind: input, shape index: {}]   ;;  %s766_s2 = inlined_call_operand.vmem [shape: f32[2,8,128], index: 2, kind: output, shape index: {}]  }
   0x1   :  { %s670_s11 = smov 0  }
   0x2 LB: > { %s24_s12 = sadd.s32 1, %s643_s10  ;;  %p551_p0 = scmp.ge.s32.totalorder %s647_s11, 1  ;;  %s647_s11 = sphi %s670_s11, %s12_s11   ;;  %s643_s10 = sphi %s668_s10, %s768_s10   ;;  %s639_s9 = sphi %s666_s9, %s767_s9  }
   0x3   : > { %p26_p1 = scmp.ge.s32.totalorder %s24_s12, 2  ;;  %p144_p2 = scmp.lt.s32.totalorder %s647_s11, 3 }
   0x5   : > { %s770_s12 = smov (%p26_p1, %s24_s12), 0  ;;  %p145_p3 = pnand %p551_p0, %p144_p2 }
   0x6   : > { %p176_p4 = scmp.lt.s32.totalorder (!%p145_p3), %s639_s9, 1  ;;  %v649_v0 = vmov (!%p145_p3), -1e+30   ;;  %v238_v2 = vlaneseq (!%p145_p3)  ;;  %vm369_vm0 = vcmask (!%p145_p3), 1040384   ;;  %vm444_vm1 = vcmask (!%p145_p3), 0  }
   0x7   : > { %148 = sbr.rel (%p145_p3) target bundleno = 580 (0x244), region = 28  ;;  %202 = vst [vmem:[#allocation5] sm:$0x1] (!%p145_p3), %v649_v0  ;;  %200 = vst [vmem:[#allocation2] sm:$0x1] (!%p145_p3), %v649_v0 }
   0x8   : > { %201 = vst [vmem:[#allocation2 + $0x1] sm:$0x1] (!%p145_p3), %v649_v0  ;;  %203 = vst [vmem:[#allocation5 + $0x1] sm:$0x1] (!%p145_p3), %v649_v0  ;;  %v239_v13 = vshrl.u32 (!%p145_p3), %v238_v2, 7 }
   0xa   : > { %v240_v22 = vsub.s32 (!%p145_p3), 0, %v239_v13 }
   0xe   : > { %s772_s9 = smov (!%p176_p4, %s639_s9), 1  ;;  %v312_v27 = vld [vmem:[#allocation5] sm:$0x1]  ;;  %v226_v29 = vld [vmem:[#allocation2] sm:$0x1] }
   0xf   : > { %s559_s13 = sshll.u32 %s772_s9, 4  ;;  %v313_v28 = vld [vmem:[#allocation5 + $0x1] sm:$0x1]  ;;  %v227_v38 = vld [vmem:[#allocation2 + $0x1] sm:$0x1]  ;;  %s556_s20 = sshll.u32 %s772_s9, 3 }
  0x10   : > { %s191_s16 = scalar_lea.vmem %s765_s1, %s559_s13  ;;  %s183_s19 = scalar_lea.vmem %s764_s0, %s559_s13 }
  0x11   : > { %v693_v1 = vld [vmem:[%s191_s16] sm:$0xff]  ;;  %v695_v3 = vld [vmem:[%s191_s16 + $0x8] sm:$0xff]  ;;  %s195_s24 = scalar_lea.vmem %s766_s2, %s556_s20 }
  0x12   : > { %v697_v4 = vld [vmem:[%s183_s19] sm:$0xff]  ;;  %v300_v5 = vrot.slane %v693_v1, 4  ;;  %v306_v6 = vrot.slane %v695_v3, 4  ;;  %v702_v8 = vld [vmem:[%s183_s19 + $0x8] sm:$0xff] }
  0x13   : > { %v214_v7 = vrot.slane %v697_v4, 4  ;;  %v220_v12 = vrot.slane %v702_v8, 4 }
  0x14   : > { %v301_v9 = vmax.f32 %v693_v1, %v300_v5  ;;  %v307_v10 = vmax.f32 %v695_v3, %v306_v6 }
  0x15   : > { %v215_v11 = vmax.f32 %v697_v4, %v214_v7  ;;  %v221_v17 = vmax.f32 %v702_v8, %v220_v12  ;;  %v278_v7 = vsub.f32 %v697_v4, %v693_v1  ;;  %v650_v12 = vmov 0.0  }
  0x16   : > { %v302_v14 = vrot.slane %v301_v9, 2  ;;  %v308_v15 = vrot.slane %v307_v10, 2  ;;  %206 = vst [vmem:[#allocation6] sm:$0x1] %v650_v12  ;;  %204 = vst [vmem:[#allocation3] sm:$0x1] %v650_v12 }
  0x17   : > { %v216_v16 = vrot.slane %v215_v11, 2  ;;  %v222_v21 = vrot.slane %v221_v17, 2  ;;  %205 = vst [vmem:[#allocation3 + $0x1] sm:$0x1] %v650_v12  ;;  %207 = vst [vmem:[#allocation6 + $0x1] sm:$0x1] %v650_v12 }
  0x18   : > { %v303_v18 = vmax.f32 %v301_v9, %v302_v14  ;;  %v309_v19 = vmax.f32 %v307_v10, %v308_v15  ;;  %208 = vst [vmem:[#allocation4] sm:$0x1] %v650_v12  ;;  %209 = vst [vmem:[#allocation4 + $0x1] sm:$0x1] %v650_v12 }
  0x19   : > { %v217_v20 = vmax.f32 %v215_v11, %v216_v16  ;;  %v223_v26 = vmax.f32 %v221_v17, %v222_v21 }
  0x1a   : > { %v304_v23 = vrot.slane %v303_v18, 1  ;;  %v310_v24 = vrot.slane %v309_v19, 1 }
  0x1b   : > { %v218_v25 = vrot.slane %v217_v20, 1  ;;  %v224_v33 = vrot.slane %v223_v26, 1 }
  0x1c   : > { %v305_v30 = vmax.f32 %v303_v18, %v304_v23  ;;  %v311_v31 = vmax.f32 %v309_v19, %v310_v24  ;;  %v279_v18 = vsub.f32 %v702_v8, %v695_v3 }
  0x1d   : > { %v219_v32 = vmax.f32 %v217_v20, %v218_v25  ;;  %v225_v37 = vmax.f32 %v223_v26, %v224_v33 }
  0x1e   : > { %v314_v34 = vmax.f32 %v312_v27, %v305_v30  ;;  %v315_v35 = vmax.f32 %v313_v28, %v311_v31 }
  0x1f   : > { %v228_v36 = vmax.f32 %v226_v29, %v219_v32  ;;  %v229_v42 = vmax.f32 %v227_v38, %v225_v37 }
  0x20   : > { %360 = vst [vmem:[#allocation5] sm:$0x1] %v314_v34  ;;  %v327_v39 = vrot.slane %v314_v34, %v240_v22  ;;  %v331_v40 = vrot.slane %v315_v35, %v240_v22  ;;  %361 = vst [vmem:[#allocation5 + $0x1] sm:$0x1] %v315_v35  ;;  %v316_v49 = vsub.f32 %v312_v27, %v314_v34 }
  0x21   : > { %298 = vst [vmem:[#allocation2] sm:$0x1] %v228_v36  ;;  %v241_v41 = vrot.slane %v228_v36, %v240_v22  ;;  %v245_v46 = vrot.slane %v229_v42, %v240_v22  ;;  %299 = vst [vmem:[#allocation2 + $0x1] sm:$0x1] %v229_v42  ;;  %v317_v56 = vsub.f32 %v313_v28, %v315_v35 }
  0x22   : > { %v334_v43 = vsub.f32 %v693_v1, %v327_v39  ;;  %v335_v44 = vsub.f32 %v695_v3, %v331_v40  ;;  %v318_v58 = vmul.f32 1.442695, %v316_v49  ;;  %v230_v59 = vsub.f32 %v226_v29, %v228_v36  ;;  %v340_v29 = vld [vmem:[#allocation6] sm:$0x1] }
  0x23   : > { %v248_v45 = vsub.f32 %v697_v4, %v241_v41  ;;  %v249_v51 = vsub.f32 %v702_v8, %v245_v46  ;;  %v320_v0 = vmul.f32 1.442695, %v317_v56  ;;  %v231_v5 = vsub.f32 %v227_v38, %v229_v42 }
  0x24   : > { %v336_v47 = vmul.f32 1.442695, %v334_v43  ;;  %v338_v48 = vmul.f32 1.442695, %v335_v44  ;;  %v232_v2 = vmul.f32 1.442695, %v230_v59 }
  0x25   : > { %v250_v50 = vmul.f32 1.442695, %v248_v45  ;;  %v252_v60 = vmul.f32 1.442695, %v249_v51  ;;  %v234_v10 = vmul.f32 1.442695, %v231_v5 }
  0x26   : > { %589 = vpow2.f32 %v336_v47  ;;  %v341_v43 = vld [vmem:[#allocation6 + $0x1] sm:$0x1]  ;;  %v254_v44 = vld [vmem:[#allocation3] sm:$0x1]  ;;  %v274_v45 = vld [vmem:[#allocation4] sm:$0x1] }
  0x27   : > { %v713_v52 = vld [vmem:[#allocation5] sm:$0x1]  ;;  %591 = vpow2.f32 %v338_v48  ;;  %v715_v53 = vld [vmem:[#allocation5 + $0x1] sm:$0x1] }
  0x28   : > { %v717_v54 = vld [vmem:[#allocation2] sm:$0x1]  ;;  %v376_v55 = vsel %vm369_vm0, %v713_v52, -inf  ;;  %593 = vpow2.f32 %v250_v50  ;;  %v379_v61 = vsel %vm369_vm0, %v715_v53, -inf  ;;  %v725_v62 = vld [vmem:[#allocation2 + $0x1] sm:$0x1] }
  0x29   : > { %v370_v57 = vsel %vm369_vm0, %v717_v54, -inf  ;;  %377 = vmax.xlane.f32.xlu0 %v376_v55  ;;  %595 = vpow2.f32 %v252_v60  ;;  %v373_v63 = vsel %vm369_vm0, %v725_v62, -inf }
  0x2a   : > { %371 = vmax.xlane.f32.xlu1 %v370_v57  ;;  %597 = vpow2.f32 %v318_v58 }
  0x2b   : > { %599 = vpow2.f32 %v320_v0 }
  0x2c   : > { %601 = vpow2.f32 %v232_v2  ;;  %v275_v2 = vld [vmem:[#allocation4 + $0x1] sm:$0x1] }
  0x2d   : > { %380 = vmax.xlane.f32.xlu0 %v379_v61  ;;  %603 = vpow2.f32 %v234_v10  ;;  %v255_v61 = vld [vmem:[#allocation3 + $0x1] sm:$0x1] }
  0x2e   : > { %374 = vmax.xlane.f32.xlu1 %v373_v63 }
  0x30   : > { %v590_v6 = vpop.eup %589 }
  0x31   : > { %v592_v9 = vpop.eup %591  ;;  %v344_v11 = vrot.slane %v590_v6, 4 }
  0x32   : > { %v594_v13 = vpop.eup %593  ;;  %v350_v15 = vrot.slane %v592_v9, 4 }
  0x33   : > { %v345_v14 = vadd.f32 %v590_v6, %v344_v11  ;;  %v258_v16 = vrot.slane %v594_v13, 4  ;;  %v280_v17 = vmul.f32 %v594_v13, %v278_v7  ;;  %v596_v1 = vpop.eup %595 }
  0x34   : > { %v351_v19 = vadd.f32 %v592_v9, %v350_v15  ;;  %v281_v22 = vmul.f32 %v596_v1, %v279_v18  ;;  %v598_v23 = vpop.eup %597  ;;  %v264_v27 = vrot.slane %v596_v1, 4 }
  0x35   : > { %v346_v4 = vrot.slane %v345_v14, 2  ;;  %v259_v20 = vadd.f32 %v594_v13, %v258_v16  ;;  %v282_v21 = vrot.slane %v280_v17, 4  ;;  %v600_v32 = vpop.eup %599  ;;  %v342_v33 = vmul.f32 %v598_v23, %v340_v29 }
  0x36   : > { %v352_v25 = vrot.slane %v351_v19, 2  ;;  %v288_v31 = vrot.slane %v281_v22, 4  ;;  %v265_v8 = vadd.f32 %v596_v1, %v264_v27  ;;  %v602_v35 = vpop.eup %601  ;;  %v343_v47 = vmul.f32 %v600_v32, %v341_v43 }
  0x37   : > { %v347_v24 = vadd.f32 %v346_v4, %v345_v14  ;;  %v260_v26 = vrot.slane %v259_v20, 2  ;;  %v283_v28 = vadd.f32 %v282_v21, %v280_v17  ;;  %v256_v49 = vmul.f32 %v602_v35, %v254_v44  ;;  %v604_v51 = vpop.eup %603 }
  0x38   : > { %v353_v34 = vadd.f32 %v352_v25, %v351_v19  ;;  %v289_v38 = vadd.f32 %v288_v31, %v281_v22  ;;  %v266_v41 = vrot.slane %v265_v8, 2  ;;  %v276_v56 = vmul.f32 %v602_v35, %v274_v45 }
  0x39   : > { %v348_v30 = vrot.slane %v347_v24, 1  ;;  %v261_v3 = vadd.f32 %v260_v26, %v259_v20  ;;  %v284_v37 = vrot.slane %v283_v28, 2  ;;  %v257_v6 = vmul.f32 %v604_v51, %v255_v61 }
  0x3a   : > { %v354_v39 = vrot.slane %v353_v34, 1  ;;  %v267_v55 = vadd.f32 %v266_v41, %v265_v8  ;;  %v290_v58 = vrot.slane %v289_v38, 2  ;;  %v277_v10 = vmul.f32 %v604_v51, %v275_v2 }
  0x3b   : > { %v349_v36 = vadd.f32 %v348_v30, %v347_v24  ;;  %v262_v40 = vrot.slane %v261_v3, 1  ;;  %v285_v46 = vadd.f32 %v284_v37, %v283_v28 }
  0x3c   : > { %v355_v48 = vadd.f32 %v354_v39, %v353_v34  ;;  %v268_v63 = vrot.slane %v267_v55, 1  ;;  %v291_v5 = vadd.f32 %v290_v58, %v289_v38 }
  0x3d   : > { %v356_v42 = vadd.f32 %v349_v36, %v342_v33  ;;  %v263_v50 = vadd.f32 %v262_v40, %v261_v3  ;;  %v286_v57 = vrot.slane %v285_v46, 1 }
  0x3e   : > { %v357_v59 = vadd.f32 %v355_v48, %v343_v47  ;;  %v269_v7 = vadd.f32 %v268_v63, %v267_v55  ;;  %v292_v11 = vrot.slane %v291_v5, 1 }
  0x3f   : > { %358 = vst [vmem:[#allocation6] sm:$0x1] %v356_v42  ;;  %v270_v60 = vadd.f32 %v263_v50, %v256_v49  ;;  %v287_v0 = vadd.f32 %v286_v57, %v285_v46 }
  0x40   : > { %359 = vst [vmem:[#allocation6 + $0x1] sm:$0x1] %v357_v59  ;;  %v271_v12 = vadd.f32 %v269_v7, %v257_v6  ;;  %v293_v13 = vadd.f32 %v292_v11, %v291_v5 }
  0x41   : > { %272 = vst [vmem:[#allocation3] sm:$0x1] %v270_v60  ;;  %v294_v9 = vadd.f32 %v287_v0, %v276_v56 }
  0x42   : > { %273 = vst [vmem:[#allocation3 + $0x1] sm:$0x1] %v271_v12  ;;  %v295_v14 = vadd.f32 %v293_v13, %v277_v10 }
  0x43   : > { %296 = vst [vmem:[#allocation4] sm:$0x1] %v294_v9 }
  0x44   : > { %297 = vst [vmem:[#allocation4 + $0x1] sm:$0x1] %v295_v14 }
  0x47   : > { %v405_v28 = vld [vmem:[#allocation6 + $0x1] sm:$0x1] }
  0x48   : > { %v394_v25 = vld [vmem:[#allocation3] sm:$0x1] }
  0x49   : > { %v395_v31 = vld [vmem:[#allocation3 + $0x1] sm:$0x1] }
  0x4b   : > { %v415_v36 = vld [vmem:[#allocation4 + $0x1] sm:$0x1] }
  0xb6   : > { %v378_v15 = vpop.xlane.xlu0 %377 }
  0xb7   : > { %v733_v16 = vpop.xlane.xlu1 %371  ;;  %v388_v17 = vsub.f32 %v713_v52, %v378_v15  ;;  %v404_v52 = vld [vmem:[#allocation6] sm:$0x1] }
  0xb8   : > { %v382_v18 = vsub.f32 %v717_v54, %v733_v16 }
  0xb9   : > { %v390_v1 = vmul.f32 1.442695, %v388_v17 }
  0xba   : > { %v384_v4 = vmul.f32 1.442695, %v382_v18  ;;  %v381_v19 = vpop.xlane.xlu0 %380 }
  0xbb   : > { %v738_v20 = vpop.xlane.xlu1 %374  ;;  %605 = vpow2.f32 %v390_v1  ;;  %v389_v21 = vsub.f32 %v715_v53, %v381_v19  ;;  %v414_v53 = vld [vmem:[#allocation4] sm:$0x1] }
  0xbc   : > { %v383_v22 = vsub.f32 %v725_v62, %v738_v20  ;;  %607 = vpow2.f32 %v384_v4 }
  0xbd   : > { %v392_v23 = vmul.f32 1.442695, %v389_v21 }
  0xbe   : > { %v386_v24 = vmul.f32 1.442695, %v383_v22 }
  0xbf   : > { %609 = vpow2.f32 %v392_v23 }
  0xc0   : > { %611 = vpow2.f32 %v386_v24 }
  0xc5   : > { %v606_v26 = vpop.eup %605 }
  0xc6   : > { %v608_v54 = vpop.eup %607  ;;  %v406_v27 = vmul.f32 %v606_v26, %v404_v52 }
  0xc7   : > { %v396_v29 = vmul.f32 %v608_v54, %v394_v25  ;;  %v416_v35 = vmul.f32 %v608_v54, %v414_v53 }
  0xc8   : > { %v408_v30 = vsel %vm369_vm0, %v406_v27, 0.0 }
  0xc9   : > { %v610_v32 = vpop.eup %609  ;;  %409 = vadd.xlane.f32.xlu0 %v408_v30  ;;  %v398_v34 = vsel %vm369_vm0, %v396_v29, 0.0  ;;  %v418_v38 = vsel %vm369_vm0, %v416_v35, 0.0 }
  0xca   : > { %v612_v33 = vpop.eup %611  ;;  %v407_v62 = vmul.f32 %v610_v32, %v405_v28 }
  0xcb   : > { %v397_v3 = vmul.f32 %v612_v33, %v395_v31  ;;  %v417_v39 = vmul.f32 %v612_v33, %v415_v36 }
  0xcc   : > { %v411_v8 = vsel %vm369_vm0, %v407_v62, 0.0 }
  0xcd   : > { %412 = vadd.xlane.f32.xlu1 %v411_v8  ;;  %399 = vadd.xlane.f32.xlu0 %v398_v34  ;;  %v401_v37 = vsel %vm369_vm0, %v397_v3, 0.0  ;;  %v421_v40 = vsel %vm369_vm0, %v417_v39, 0.0 }
  0xd1   : > { %402 = vadd.xlane.f32.xlu1 %v401_v37  ;;  %419 = vadd.xlane.f32.xlu0 %v418_v38 }
  0xd5   : > { %422 = vadd.xlane.f32.xlu1 %v421_v40 }
 0x156   : > { %v410_v41 = vpop.xlane.xlu0 %409 }
 0x157   : > { %613 = vlog2.f32 %v410_v41 }
 0x15a   : > { %v413_v42 = vpop.xlane.xlu1 %412  ;;  %v400_v43 = vpop.xlane.xlu0 %399 }
 0x15b   : > { %615 = vlog2.f32 %v413_v42 }
 0x15c   : > { %617 = vrcp.f32 %v400_v43 }
 0x15d   : > { %619 = vlog2.f32 %v400_v43 }
 0x15e   : > { %v403_v44 = vpop.xlane.xlu1 %402  ;;  %v420_v50 = vpop.xlane.xlu0 %419 }
 0x15f   : > { %621 = vrcp.f32 %v403_v44 }
 0x160   : > { %623 = vlog2.f32 %v403_v44 }
 0x161   : > { %v614_v45 = vpop.eup %613 }
 0x162   : > { %v429_v46 = vmul.f32 0.6931472, %v614_v45  ;;  %v423_v60 = vpop.xlane.xlu1 %422 }
 0x164   : > { %v432_v55 = vadd.f32 %v429_v46, %v378_v15 }
 0x165   : > { %v616_v47 = vpop.eup %615 }
 0x166   : > { %v618_v48 = vpop.eup %617  ;;  %v431_v49 = vmul.f32 0.6931472, %v616_v47 }
 0x167   : > { %v620_v51 = vpop.eup %619  ;;  %v425_v56 = vmul.f32 %v618_v48, %v420_v50 }
 0x168   : > { %v437_v57 = vmul.f32 0.6931472, %v620_v51  ;;  %v433_v63 = vadd.f32 %v431_v49, %v381_v19 }
 0x169   : > { %v622_v58 = vpop.eup %621  ;;  %v434_v59 = vadd.f32 %v432_v55, %v425_v56 }
 0x16a   : > { %v624_v61 = vpop.eup %623  ;;  %v427_v0 = vmul.f32 %v622_v58, %v423_v60  ;;  %v440_v2 = vadd.f32 %v437_v57, %v733_v16 }
 0x16b   : > { %v439_v5 = vmul.f32 0.6931472, %v624_v61 }
 0x16c   : > { %v435_v6 = vadd.f32 %v433_v63, %v427_v0  ;;  %v442_v9 = vsub.f32 %v434_v59, %v440_v2 }
 0x16d   : > { %v441_v7 = vadd.f32 %v439_v5, %v738_v20 }
 0x16e   : > { %v445_v11 = vsel %vm444_vm1, %v442_v9, 0.0 }
 0x16f   : > { %v443_v10 = vsub.f32 %v435_v6, %v441_v7 }
 0x171   : > { %v446_v12 = vsel %vm444_vm1, %v443_v10, 0.0 }
 0x172   : > { %v447_v13 = vadd.f32 %v446_v12, %v445_v11 }
 0x174   : > { %448 = vadd.xlane.f32.xlu0 %v447_v13 }
 0x201   : > { %v449_v14 = vpop.xlane.xlu0 %448 }
 0x202   : > { %v450_v15 = vrot.slane %v449_v14, 4 }
 0x204   : > { %v451_v17 = vadd.f32 %v450_v15, %v449_v14 }
 0x206   : > { %v452_v18 = vrot.slane %v451_v17, 2 }
 0x208   : > { %v453_v1 = vadd.f32 %v452_v18, %v451_v17 }
 0x20a   : > { %v454_v4 = vrot.slane %v453_v1, 1 }
 0x20c   : > { %v455_v19 = vadd.f32 %v454_v4, %v453_v1 }
 0x20e   : > { %561 = vpush %v455_v19 }
 0x23f   : > { %s562_s21 = spop %561 }
 0x240   : > { %s459_s25 = smul.f32 0.5, %s562_s21 }
 0x242   : > { %v460_v16 = vstv %s459_s25 }
 0x243   : > { %461 = vst [vmem:[%s195_s24] sm:$0xff] %v460_v16 }
 0x244 PF: > { %s12_s11 = sadd.s32 1, %s647_s11   ;;  %s767_s9 = smov %s643_s10 }
 0x245   : > { %p9_p5 = scmp.ge.s32.totalorder %s12_s11, 4   ;;  %s768_s10 = smov %s770_s12 }
 0x247   :  { %11 = sbr.rel (!%p9_p5) target bundleno = 2 (0x2), region = 69 }

</bundles_post_ra>
